<compile_context>
chip_gen: v7x
topology: tpu7x:2x2x1
jax: 0.10.0
libtpu: 0.0.40
codegen_flags: <defaults>
</compile_context>

<pallas_src>
import jax
import jax.numpy as jnp
import numpy as np
from jax.experimental import pallas as pl
from jax.experimental.pallas import tpu as pltpu

INPUT_SIZE = 100
K_PAD = 128           # fc1 contraction dim padded to a full lane width
HIDDEN = 128
OUTPUT = 4
EPS = 1e-5            # PyTorch BatchNorm1d default eps


def pokernet_kernel(x_ref, w1_ref, w2_ref, w3_ref, wo_ref, b23_ref, bo_ref,
                    out_ref):
    cdt = x_ref.dtype          # MXU compute dtype (bf16)
    ewdt = b23_ref.dtype       # element-wise dtype (bf16 on v6e/v7x)

    x = x_ref[...]             # (TB, K_PAD); col 100 is the fc1-bias "1"

    # fc1 (+ folded bn1, bias rides the padded K) -> relu   [dropout = id]
    h1 = jnp.maximum(
        jnp.dot(x, w1_ref[...], preferred_element_type=jnp.float32)
        .astype(ewdt), 0.0)

    # fc2 (+ folded bn2) -> relu                            [dropout = id]
    h2 = jnp.maximum(
        jnp.dot(h1.astype(cdt), w2_ref[...],
                preferred_element_type=jnp.float32).astype(ewdt)
        + b23_ref[0:1, :], 0.0)

    # fc3 -> relu
    h3 = jnp.maximum(
        jnp.dot(h2.astype(cdt), w3_ref[...],
                preferred_element_type=jnp.float32).astype(ewdt)
        + b23_ref[1:2, :], 0.0)

    # out projection; (TB, OUTPUT) stored directly (output traffic is tiny)
    out = jnp.dot(h3.astype(cdt), wo_ref[...],
                  preferred_element_type=jnp.float32)
    out_ref[...] = out + bo_ref[...]


def _const_spec(shape):
    """Full-array block with a constant index_map -> VMEM-resident weight."""
    nd = len(shape)
    return pl.BlockSpec(shape, lambda i, _nd=nd: (0,) * _nd)


def _fold_bn(w, b, gamma, beta, mean, var):
    """Fold eval-mode BatchNorm1d into the preceding Linear layer."""
    s = gamma * jax.lax.rsqrt(var + EPS)       # (1, F)
    return w * s, (b - mean) * s + beta


def prepare_params(params, *, compute_dtype=jnp.bfloat16,
                   elementwise_dtype=jnp.bfloat16):
    """One-time parameter prep (hoisted out of the per-batch forward).

    params: flat list in PyTorch layout (see make_params).
    Returns (w1p, w2c, w3c, woc, b23, bo_f) ready for pokernet_forward.
    """
    (w1, b1, g1, be1, m1, v1,
     w2, b2, g2, be2, m2, v2,
     w3, b3, wo, bo) = params

    w1f, b1f = _fold_bn(w1, b1, g1, be1, m1, v1)
    w2f, b2f = _fold_bn(w2, b2, g2, be2, m2, v2)

    # Pad fc1's K from 100 -> 128; row INPUT_SIZE carries the folded bias
    # (matches the ones column appended to x in the wrapper).
    pad_rows = K_PAD - INPUT_SIZE - 1
    w1p = jnp.concatenate(
        [w1f, b1f, jnp.zeros((pad_rows, HIDDEN), w1f.dtype)],
        axis=0).astype(compute_dtype)                       # (K_PAD, HIDDEN)

    w2c = w2f.astype(compute_dtype)                         # (HIDDEN, HIDDEN)
    w3c = w3.astype(compute_dtype)                          # (HIDDEN, HIDDEN)
    woc = wo.astype(compute_dtype)                          # (HIDDEN, OUTPUT)

    b23 = jnp.concatenate([b2f, b3], axis=0).astype(elementwise_dtype)  # (2,H)
    bo_f = bo.reshape(1, OUTPUT).astype(jnp.float32)                    # (1,O)

    return (w1p, w2c, w3c, woc, b23, bo_f)


def pokernet_forward(x, prepared, *, tile_b=2048, compute_dtype=jnp.bfloat16,
                     vmem_limit_bytes=32 * 1024 * 1024):
    """x: (B, INPUT_SIZE) f32.  prepared: output of prepare_params()."""
    w1p, w2c, w3c, woc, b23, bo_f = prepared
    B = x.shape[0]

    # Cast to compute dtype and pad K 100 -> 128 in one pass:
    # column INPUT_SIZE = 1.0 (carries fc1's bias through the matmul).
    xp = jnp.concatenate(
        [x,
         jnp.ones((B, 1), x.dtype),
         jnp.zeros((B, K_PAD - INPUT_SIZE - 1), x.dtype)],
        axis=1).astype(compute_dtype)                       # (B, K_PAD)

    tb = min(tile_b, B)
    # v7x megacore: a single grid step leaves the second TensorCore idle.
    # Split into two 8-aligned tiles when the batch allows it for free.
    if tb == B and B >= 16 and B % 16 == 0:
        tb = B // 2
    n_tiles = pl.cdiv(B, tb)
    b_pad = n_tiles * tb
    if b_pad != B:
        # TODO(synk): handle the ragged tail without a full-x copy
        # (e.g. a small second pallas_call for the remainder).
        xp = jnp.pad(xp, ((0, b_pad - B), (0, 0)))

    grid_spec = pltpu.PrefetchScalarGridSpec(
        num_scalar_prefetch=0,
        grid=(n_tiles,),
        in_specs=[
            pl.BlockSpec((tb, K_PAD), lambda i: (i, 0)),    # x, pipelined
            _const_spec(w1p.shape),                         # weights resident
            _const_spec(w2c.shape),
            _const_spec(w3c.shape),
            _const_spec(woc.shape),
            _const_spec(b23.shape),
            _const_spec(bo_f.shape),
        ],
        out_specs=pl.BlockSpec((tb, OUTPUT), lambda i: (i, 0)),
    )

    out = pl.pallas_call(
        pokernet_kernel,
        out_shape=jax.ShapeDtypeStruct((b_pad, OUTPUT), jnp.float32),
        grid_spec=grid_spec,
        compiler_params=pltpu.CompilerParams(
            dimension_semantics=("parallel",),
            vmem_limit_bytes=vmem_limit_bytes),
    )(xp, w1p, w2c, w3c, woc, b23, bo_f)

    return out[:B] if b_pad != B else out                   # (B, OUTPUT)


def make_params(key):
    """Deterministic synthetic parameters (PyTorch-default BN stats)."""
    ks = jax.random.split(key, 8)

    def lin(kw, kb, fan_in, fan_out):
        bound = 1.0 / np.sqrt(fan_in)
        w = jax.random.uniform(kw, (fan_in, fan_out), jnp.float32, -bound, bound)
        b = jax.random.uniform(kb, (1, fan_out), jnp.float32, -bound, bound)
        return w, b

    w1, b1 = lin(ks[0], ks[1], INPUT_SIZE, HIDDEN)
    w2, b2 = lin(ks[2], ks[3], HIDDEN, HIDDEN)
    w3, b3 = lin(ks[4], ks[5], HIDDEN, HIDDEN)
    wo, bo = lin(ks[6], ks[7], HIDDEN, OUTPUT)

    ones = jnp.ones((1, HIDDEN), jnp.float32)
    zeros = jnp.zeros((1, HIDDEN), jnp.float32)
    # bn: gamma, beta, running_mean, running_var
    g1, be1, m1, v1 = ones, zeros, zeros, ones
    g2, be2, m2, v2 = ones, zeros, zeros, ones

    return [w1, b1, g1, be1, m1, v1,
            w2, b2, g2, be2, m2, v2,
            w3, b3,
            wo, bo]


def reference_forward(x, p):
    """Pure-JAX f32 reference with un-folded params (PyTorch eval semantics)."""
    (w1, b1, g1, be1, m1, v1,
     w2, b2, g2, be2, m2, v2,
     w3, b3, wo, bo) = p
    z1 = x @ w1 + b1
    h1 = jnp.maximum((z1 - m1) * (g1 / jnp.sqrt(v1 + EPS)) + be1, 0.0)
    z2 = h1 @ w2 + b2
    h2 = jnp.maximum((z2 - m2) * (g2 / jnp.sqrt(v2 + EPS)) + be2, 0.0)
    h3 = jnp.maximum(h2 @ w3 + b3, 0.0)
    return h3 @ wo + bo


if __name__ == "__main__":
    key = jax.random.PRNGKey(0)
    kx, kp = jax.random.split(key)
    batch = 8
    x = jax.random.normal(kx, (batch, INPUT_SIZE), jnp.float32)
    params = make_params(kp)

    prepared = prepare_params(params)           # one-time prep, reused per call
    out = pokernet_forward(x, prepared)
    out = jax.block_until_ready(out)

    ref = reference_forward(x, params)
    # bf16 weights/activations/element-wise with f32 accumulation -> relaxed tol.
    np.testing.assert_allclose(np.asarray(out), np.asarray(ref),
                               rtol=2e-2, atol=2e-2)
    print("KERNEL_OK")
</pallas_src>

<mosaic_0001>
module attributes {stable_mosaic.version = 11 : i64} {
  func.func @pokernet_kernel(%arg0: i32, %arg1: memref<8x128xbf16, #tpu.memory_space<vmem>>, %arg2: memref<128x128xbf16, #tpu.memory_space<vmem>>, %arg3: memref<128x128xbf16, #tpu.memory_space<vmem>>, %arg4: memref<128x128xbf16, #tpu.memory_space<vmem>>, %arg5: memref<128x4xbf16, #tpu.memory_space<vmem>>, %arg6: memref<2x128xbf16, #tpu.memory_space<vmem>>, %arg7: memref<1x4xf32, #tpu.memory_space<vmem>>, %arg8: memref<8x4xf32, #tpu.memory_space<vmem>>) attributes {dimension_semantics = [#tpu.dimension_semantics<parallel>], iteration_bounds = array<i64: 1>, scalar_prefetch = 0 : i64, scratch_operands = 0 : i64, tpu.core_type = #tpu.core_type<tc>, window_params = [{transform_indices = @transform_0, window_bounds = array<i64: 8, 128>}, {pipeline_mode = #tpu.pipeline_mode<synchronous>, transform_indices = @transform_1, window_bounds = array<i64: 128, 128>}, {pipeline_mode = #tpu.pipeline_mode<synchronous>, transform_indices = @transform_2, window_bounds = array<i64: 128, 128>}, {pipeline_mode = #tpu.pipeline_mode<synchronous>, transform_indices = @transform_3, window_bounds = array<i64: 128, 128>}, {pipeline_mode = #tpu.pipeline_mode<synchronous>, transform_indices = @transform_4, window_bounds = array<i64: 128, 4>}, {pipeline_mode = #tpu.pipeline_mode<synchronous>, transform_indices = @transform_5, window_bounds = array<i64: 2, 128>}, {pipeline_mode = #tpu.pipeline_mode<synchronous>, transform_indices = @transform_6, window_bounds = array<i64: 1, 4>}, {transform_indices = @transform_7, window_bounds = array<i64: 8, 4>}]} {
    %c0 = arith.constant 0 : index
    %c0_0 = arith.constant 0 : index
    %0 = vector.load %arg1[%c0, %c0_0] : memref<8x128xbf16, #tpu.memory_space<vmem>>, vector<8x128xbf16>
    %c0_1 = arith.constant 0 : index
    %c0_2 = arith.constant 0 : index
    %1 = vector.load %arg2[%c0_1, %c0_2] : memref<128x128xbf16, #tpu.memory_space<vmem>>, vector<128x128xbf16>
    %cst = arith.constant dense<0.000000e+00> : vector<8x128xf32>
    %2 = tpu.matmul %0, %1, %cst {dimension_numbers = #tpu.dot_dimension_numbers<[1], [0], [0], [1], [0, 0, 1, 1], [], []>} : vector<8x128xbf16>, vector<128x128xbf16>, vector<8x128xf32> -> vector<8x128xf32>
    %3 = arith.truncf %2 : vector<8x128xf32> to vector<8x128xbf16>
    %cst_3 = arith.constant 0.000000e+00 : bf16
    %4 = vector.broadcast %cst_3 : bf16 to vector<8x128xbf16>
    %5 = arith.maximumf %3, %4 : vector<8x128xbf16>
    %c0_4 = arith.constant 0 : index
    %c0_5 = arith.constant 0 : index
    %6 = vector.load %arg3[%c0_4, %c0_5] : memref<128x128xbf16, #tpu.memory_space<vmem>>, vector<128x128xbf16>
    %cst_6 = arith.constant dense<0.000000e+00> : vector<8x128xf32>
    %7 = tpu.matmul %5, %6, %cst_6 {dimension_numbers = #tpu.dot_dimension_numbers<[1], [0], [0], [1], [0, 0, 1, 1], [], []>} : vector<8x128xbf16>, vector<128x128xbf16>, vector<8x128xf32> -> vector<8x128xf32>
    %8 = arith.truncf %7 : vector<8x128xf32> to vector<8x128xbf16>
    %c0_7 = arith.constant 0 : index
    %c0_8 = arith.constant 0 : index
    %9 = vector.load %arg6[%c0_7, %c0_8] : memref<2x128xbf16, #tpu.memory_space<vmem>>, vector<1x128xbf16>
    %10 = vector.broadcast %9 : vector<1x128xbf16> to vector<8x128xbf16>
    %11 = arith.addf %8, %10 : vector<8x128xbf16>
    %cst_9 = arith.constant 0.000000e+00 : bf16
    %12 = vector.broadcast %cst_9 : bf16 to vector<8x128xbf16>
    %13 = arith.maximumf %11, %12 : vector<8x128xbf16>
    %c0_10 = arith.constant 0 : index
    %c0_11 = arith.constant 0 : index
    %14 = vector.load %arg4[%c0_10, %c0_11] : memref<128x128xbf16, #tpu.memory_space<vmem>>, vector<128x128xbf16>
    %cst_12 = arith.constant dense<0.000000e+00> : vector<8x128xf32>
    %15 = tpu.matmul %13, %14, %cst_12 {dimension_numbers = #tpu.dot_dimension_numbers<[1], [0], [0], [1], [0, 0, 1, 1], [], []>} : vector<8x128xbf16>, vector<128x128xbf16>, vector<8x128xf32> -> vector<8x128xf32>
    %16 = arith.truncf %15 : vector<8x128xf32> to vector<8x128xbf16>
    %c1 = arith.constant 1 : index
    %c0_13 = arith.constant 0 : index
    %17 = vector.load %arg6[%c1, %c0_13] : memref<2x128xbf16, #tpu.memory_space<vmem>>, vector<1x128xbf16>
    %18 = vector.broadcast %17 : vector<1x128xbf16> to vector<8x128xbf16>
    %19 = arith.addf %16, %18 : vector<8x128xbf16>
    %cst_14 = arith.constant 0.000000e+00 : bf16
    %20 = vector.broadcast %cst_14 : bf16 to vector<8x128xbf16>
    %21 = arith.maximumf %19, %20 : vector<8x128xbf16>
    %c0_15 = arith.constant 0 : index
    %c0_16 = arith.constant 0 : index
    %22 = vector.load %arg5[%c0_15, %c0_16] : memref<128x4xbf16, #tpu.memory_space<vmem>>, vector<128x4xbf16>
    %cst_17 = arith.constant dense<0.000000e+00> : vector<8x4xf32>
    %23 = tpu.matmul %21, %22, %cst_17 {dimension_numbers = #tpu.dot_dimension_numbers<[1], [0], [0], [1], [0, 0, 1, 1], [], []>} : vector<8x128xbf16>, vector<128x4xbf16>, vector<8x4xf32> -> vector<8x4xf32>
    %c0_18 = arith.constant 0 : index
    %c0_19 = arith.constant 0 : index
    %24 = vector.load %arg7[%c0_18, %c0_19] : memref<1x4xf32, #tpu.memory_space<vmem>>, vector<1x4xf32>
    %25 = vector.broadcast %24 : vector<1x4xf32> to vector<8x4xf32>
    %26 = arith.addf %23, %25 : vector<8x4xf32>
    %c0_20 = arith.constant 0 : index
    %c0_21 = arith.constant 0 : index
    %27 = vector.load %arg8[%c0_20, %c0_21] : memref<8x4xf32, #tpu.memory_space<vmem>>, vector<8x4xf32>
    tpu.vector_store %arg8[%c0_20, %c0_21], %26 {strides = array<i32>} : memref<8x4xf32, #tpu.memory_space<vmem>>, vector<8x4xf32>,
    return
  }
  func.func @transform_0(%arg0: i32) -> (i32, i32) {
    %c0_i32 = arith.constant 0 : i32
    %c0_i32_0 = arith.constant 0 : i32
    return %arg0, %c0_i32 : i32, i32
  }
  func.func @transform_1(%arg0: i32) -> (i32, i32) {
    %c0_i32 = arith.constant 0 : i32
    %c0_i32_0 = arith.constant 0 : i32
    %c0_i32_1 = arith.constant 0 : i32
    return %c0_i32, %c0_i32_0 : i32, i32
  }
  func.func @transform_2(%arg0: i32) -> (i32, i32) {
    %c0_i32 = arith.constant 0 : i32
    %c0_i32_0 = arith.constant 0 : i32
    %c0_i32_1 = arith.constant 0 : i32
    return %c0_i32, %c0_i32_0 : i32, i32
  }
  func.func @transform_3(%arg0: i32) -> (i32, i32) {
    %c0_i32 = arith.constant 0 : i32
    %c0_i32_0 = arith.constant 0 : i32
    %c0_i32_1 = arith.constant 0 : i32
    return %c0_i32, %c0_i32_0 : i32, i32
  }
  func.func @transform_4(%arg0: i32) -> (i32, i32) {
    %c0_i32 = arith.constant 0 : i32
    %c0_i32_0 = arith.constant 0 : i32
    %c0_i32_1 = arith.constant 0 : i32
    return %c0_i32, %c0_i32_0 : i32, i32
  }
  func.func @transform_5(%arg0: i32) -> (i32, i32) {
    %c0_i32 = arith.constant 0 : i32
    %c0_i32_0 = arith.constant 0 : i32
    %c0_i32_1 = arith.constant 0 : i32
    return %c0_i32, %c0_i32_0 : i32, i32
  }
  func.func @transform_6(%arg0: i32) -> (i32, i32) {
    %c0_i32 = arith.constant 0 : i32
    %c0_i32_0 = arith.constant 0 : i32
    %c0_i32_1 = arith.constant 0 : i32
    return %c0_i32, %c0_i32_0 : i32, i32
  }
  func.func @transform_7(%arg0: i32) -> (i32, i32) {
    %c0_i32 = arith.constant 0 : i32
    %c0_i32_0 = arith.constant 0 : i32
    return %arg0, %c0_i32 : i32, i32
  }
}

</mosaic_0001>

<bundles_post_ra>
// kernel: tpu_custom_call.1
= control target key start
LH: loop header
LB: loop body
LE: loop exit
PB: predicated region body
PF: predicated region fallthrough
CT: control target
= control target key end

     0   :  { %12 = vsyncpa [#allocation3], 0  ;;  %s917_s0 = inlined_call_operand.vmem [shape: bf16[8,128], index: 0, kind: input, shape index: {}]   ;;  %s918_s1 = inlined_call_operand.vmem [shape: bf16[128,128], index: 1, kind: input, shape index: {}]   ;;  %s919_s2 = inlined_call_operand.hbm [shape: bf16[128,128], index: 2, kind: input, shape index: {}]   ;;  %s920_s3 = inlined_call_operand.hbm [shape: bf16[128,128], index: 3, kind: input, shape index: {}]   ;;  %s921_s4 = inlined_call_operand.vmem [shape: bf16[128,4], index: 4, kind: input, shape index: {}]   ;;  %s922_s5 = inlined_call_operand.vmem [shape: bf16[2,128], index: 5, kind: input, shape index: {}]   ;;  %s923_s6 = inlined_call_operand.vmem [shape: f32[1,4], index: 6, kind: input, shape index: {}]   ;;  %s924_s7 = inlined_call_operand.vmem [shape: f32[8,4], index: 7, kind: output, shape index: {}]  }
   0x1   :  { %13 = vsyncpa [#allocation5], 0  ;;  %s746_s24 = smov [#allocation2]   ;;  %s698_s28 = scalar_lea.hbm %s919_s2, 1024 }
   0x2   :  { %s23_s25 = sshll.u32 %s746_s24, 4  ;;  %p699_p0 = scmp.ne.s32.totalorder %s919_s2, %s698_s28  ;;  %s24_s25 = int_to_ptr.vmem [resolvable:$true] %s23_s25 }
   0x3   :  { %p702_p1 = scmp.lt.u32.totalorder %s698_s28, %s919_s2 }
   0x5   :  { %p704_p2 = pnand %p702_p1, %p699_p0 }
   0x7   :  { %707 = shalt.err (!%p704_p2)
}
   0x8   :  { %s708_s10 = scalar_lea.vmem %s24_s25, 1024  ;;  %p713_p4 = scmp.lt.s32.totalorder %s24_s25, %s24_s25 }
   0x9   :  { %p709_p3 = scmp.ne.s32.totalorder %s24_s25, %s708_s10  ;;  %p714_p5 = scmp.lt.s32.totalorder %s708_s10, %s708_s10 }
   0xb   :  { %p715_p6 = por %p714_p5, %p713_p4 }
   0xd   :  { %p716_p7 = pnand %p715_p6, %p709_p3 }
   0xf   :  { %719 = shalt.err (!%p716_p7)
}
  0x10   :  { %s747_s11 = smov 64   ;;  %s748_s12 = smov 4  }
  0x11   :  { %29 = dma.hbm_to_vmem [thread:$0]  %s919_s2, 1024, %s24_s25, [#allocation3], %s747_s11, %s747_s11, %s748_s12  }
  0x12   :  { %s749_s15 = smov [#allocation4]   ;;  %s720_s19 = scalar_lea.hbm %s920_s3, 1024 }
  0x13   :  { %s35_s16 = sshll.u32 %s749_s15, 4  ;;  %p721_p8 = scmp.ne.s32.totalorder %s920_s3, %s720_s19  ;;  %s36_s16 = int_to_ptr.vmem [resolvable:$true] %s35_s16 }
  0x14   :  { %p724_p9 = scmp.lt.u32.totalorder %s720_s19, %s920_s3 }
  0x16   :  { %p726_p10 = pnand %p724_p9, %p721_p8 }
  0x18   :  { %729 = shalt.err (!%p726_p10)
}
  0x19   :  { %s730_s24 = scalar_lea.vmem %s36_s16, 1024  ;;  %p735_p12 = scmp.lt.s32.totalorder %s36_s16, %s36_s16 }
  0x1a   :  { %p731_p11 = scmp.ne.s32.totalorder %s36_s16, %s730_s24  ;;  %p736_p13 = scmp.lt.s32.totalorder %s730_s24, %s730_s24 }
  0x1c   :  { %p737_p0 = por %p736_p13, %p735_p12 }
  0x1e   :  { %p738_p1 = pnand %p737_p0, %p731_p11 }
  0x20   :  { %741 = shalt.err (!%p738_p1)
}
  0x21   :  { %41 = dma.hbm_to_vmem [thread:$0]  %s920_s3, 1024, %s36_s16, [#allocation5], %s747_s11, %s747_s11, %s748_s12  }
  0x22   :  { %742 = dma.done.wait [#allocation3], 1024  }
  0x23   :  { %743 = vsyncadd [#allocation3], 4294966272 }
  0x24   :  { %744 = dma.done.wait [#allocation5], 1024  }
  0x25   :  { %745 = vsyncadd [#allocation5], 4294966272  ;;  %v750_v0 = vmov 0.0   ;;  %vm751_vm0 = vmmov 0   ;;  %v666_v1 = vld [vmem:[%s918_s1] sm:$0xff]   ;;  %v667_v2 = vld [vmem:[%s918_s1 + $0x8] sm:$0xff]   ;;  %v271_v39 = vlaneseq }
  0x26   :  { %579 = vmatprep.subr.bf16.mxu0 %v750_v0  ;;  %595 = vmatprep.mubr.msk.bf16.mxu0 %vm751_vm0, %v750_v0  ;;  %v668_v3 = vld [vmem:[%s918_s1 + $0x10] sm:$0xff]   ;;  %v674_v4 = vld [vmem:[#allocation2] sm:$0xff]   ;;  %v669_v5 = vld [vmem:[%s918_s1 + $0x18] sm:$0xff]   ;;  %v752_v28 = vmov 0   ;;  %vm502_vm1 = vcmask 31744  }
  0x27   :  { %599 = vmatprep.subr.bf16.mxu1 %v750_v0  ;;  %615 = vmatprep.mubr.msk.bf16.mxu1 %vm751_vm0, %v750_v0  ;;  %v675_v6 = vld [vmem:[#allocation2 + $0x8] sm:$0xff]   ;;  %v670_v7 = vld [vmem:[%s918_s1 + $0x20] sm:$0xff]   ;;  %v676_v8 = vld [vmem:[#allocation2 + $0x10] sm:$0xff]   ;;  %v272_v40 = vshrl.u32 %v271_v39, 7 }
  0x28   :  { %580 = vmatpush3.bf16.msra.mxu0 %v666_v1  ;;  %600 = vmatpush3.bf16.msra.mxu1 %v674_v4  ;;  %v671_v9 = vld [vmem:[%s918_s1 + $0x28] sm:$0xff]   ;;  %v677_v10 = vld [vmem:[#allocation2 + $0x18] sm:$0xff]   ;;  %v672_v11 = vld [vmem:[%s918_s1 + $0x30] sm:$0xff]  }
  0x29   :  { %581 = vmatprep.subr.bf16.mxu0 %v750_v0  ;;  %601 = vmatprep.subr.bf16.mxu1 %v750_v0  ;;  %v678_v12 = vld [vmem:[#allocation2 + $0x20] sm:$0xff]   ;;  %v673_v13 = vld [vmem:[%s918_s1 + $0x38] sm:$0xff]   ;;  %v679_v14 = vld [vmem:[#allocation2 + $0x28] sm:$0xff]   ;;  %v273_v43 = vsub.s32 0, %v272_v40 }
  0x2a   :  { %v55_v15 = vld [vmem:[%s917_s0] sm:$0xf]  ;;  %v680_v16 = vld [vmem:[#allocation2 + $0x30] sm:$0xff]   ;;  %v681_v17 = vld [vmem:[#allocation2 + $0x38] sm:$0xff]  }
  0x2b   :  { %v682_v18 = vld [vmem:[#allocation4] sm:$0xff]   ;;  %v683_v19 = vld [vmem:[#allocation4 + $0x8] sm:$0xff]   ;;  %v684_v20 = vld [vmem:[#allocation4 + $0x10] sm:$0xff]  }
  0x2c   :  { %582 = vmatpush3.bf16.msra.mxu0 %v667_v2  ;;  %602 = vmatpush3.bf16.msra.mxu1 %v675_v6  ;;  %v685_v21 = vld [vmem:[#allocation4 + $0x18] sm:$0xff]   ;;  %v686_v22 = vld [vmem:[#allocation4 + $0x20] sm:$0xff]   ;;  %v687_v23 = vld [vmem:[#allocation4 + $0x28] sm:$0xff]  }
  0x2d   :  { %583 = vmatprep.subr.bf16.mxu0 %v750_v0  ;;  %603 = vmatprep.subr.bf16.mxu1 %v750_v0  ;;  %v688_v31 = vld [vmem:[#allocation4 + $0x30] sm:$0xff]   ;;  %v689_v32 = vld [vmem:[#allocation4 + $0x38] sm:$0xff]   ;;  %v690_v33 = vld [vmem:[%s921_s4] sm:$0xff]  }
  0x2e   :  { %v691_v34 = vld [vmem:[%s921_s4 + $0x8] sm:$0xff]   ;;  %v692_v35 = vld [vmem:[%s921_s4 + $0x10] sm:$0xff]   ;;  %v693_v36 = vld [vmem:[%s921_s4 + $0x18] sm:$0xff]  }
  0x2f   :  { %v694_v37 = vld [vmem:[%s921_s4 + $0x20] sm:$0xff]   ;;  %v695_v38 = vld [vmem:[%s921_s4 + $0x28] sm:$0xff]   ;;  %v696_v52 = vld [vmem:[%s921_s4 + $0x30] sm:$0xff]  }
  0x30   :  { %584 = vmatpush3.bf16.msra.mxu0 %v668_v3  ;;  %604 = vmatpush3.bf16.msra.mxu1 %v676_v8  ;;  %v267_v41 = vld [vmem:[%s922_s5] sm:$0x1]  ;;  %v697_v53 = vld [vmem:[%s921_s4 + $0x38] sm:$0xff]  }
  0x31   :  { %585 = vmatprep.subr.bf16.mxu0 %v750_v0  ;;  %605 = vmatprep.subr.bf16.mxu1 %v750_v0  ;;  %v269_v42 = vpack.i.b16 %v267_v41, %v267_v41  ;;  %v382_v54 = vshrl.u32 %v267_v41, 16 }
  0x33   :  { %v274_v44 = vrot.slane %v269_v42, %v273_v43  ;;  %v383_v55 = vpack.i.b16 %v382_v54, %v382_v54 }
  0x34   :  { %586 = vmatpush3.bf16.msra.mxu0 %v669_v5  ;;  %606 = vmatpush3.bf16.msra.mxu1 %v677_v10 }
  0x35   :  { %587 = vmatprep.subr.bf16.mxu0 %v750_v0  ;;  %607 = vmatprep.subr.bf16.mxu1 %v750_v0  ;;  %v388_v56 = vrot.slane %v383_v55, %v273_v43 }
  0x38   :  { %588 = vmatpush3.bf16.msra.mxu0 %v670_v7  ;;  %608 = vmatpush3.bf16.msra.mxu1 %v678_v12 }
  0x39   :  { %589 = vmatprep.subr.bf16.mxu0 %v750_v0  ;;  %609 = vmatprep.subr.bf16.mxu1 %v750_v0 }
  0x3c   :  { %590 = vmatpush3.bf16.msra.mxu0 %v671_v9  ;;  %610 = vmatpush3.bf16.msra.mxu1 %v679_v14 }
  0x3d   :  { %591 = vmatprep.subr.bf16.mxu0 %v750_v0  ;;  %611 = vmatprep.subr.bf16.mxu1 %v750_v0 }
  0x40   :  { %592 = vmatpush3.bf16.msra.mxu0 %v672_v11  ;;  %612 = vmatpush3.bf16.msra.mxu1 %v680_v16 }
  0x41   :  { %593 = vmatprep.subr.bf16.mxu0 %v750_v0  ;;  %613 = vmatprep.subr.bf16.mxu1 %v750_v0 }
  0x44   :  { %594 = vmatpush3.bf16.msra.mxu0 %v673_v13  ;;  %614 = vmatpush3.bf16.msra.mxu1 %v681_v17 }
  0x45   :  { %619 = vmatprep.subr.bf16.mxu0 %v750_v0  ;;  %639 = vmatprep.subr.bf16.mxu1 %v750_v0 }
  0x47   :  { %596 = vmatmul.mubr.bf16.vlgmr.msra.gmra.mrb[0].mxu0 %v55_v15 }
  0x48   :  { %635 = vmatprep.mubr.msk.bf16.mxu0 %vm751_vm0, %v750_v0  ;;  %620 = vmatpush3.bf16.msra.mxu0 %v682_v18 }
  0x49   :  { %621 = vmatprep.subr.bf16.mxu0 %v750_v0 }
  0x4c   :  { %622 = vmatpush3.bf16.msra.mxu0 %v683_v19 }
  0x4d   :  { %623 = vmatprep.subr.bf16.mxu0 %v750_v0 }
  0x50   :  { %624 = vmatpush3.bf16.msra.mxu0 %v684_v20 }
  0x51   :  { %625 = vmatprep.subr.bf16.mxu0 %v750_v0 }
  0x54   :  { %626 = vmatpush3.bf16.msra.mxu0 %v685_v21 }
  0x55   :  { %627 = vmatprep.subr.bf16.mxu0 %v750_v0 }
  0x58   :  { %628 = vmatpush3.bf16.msra.mxu0 %v686_v22 }
  0x59   :  { %629 = vmatprep.subr.bf16.mxu0 %v750_v0 }
  0x5c   :  { %630 = vmatpush3.bf16.msra.mxu0 %v687_v23 }
  0x5d   :  { %631 = vmatprep.subr.bf16.mxu0 %v750_v0 }
  0x60   :  { %632 = vmatpush3.bf16.msra.mxu0 %v688_v31 }
  0x61   :  { %633 = vmatprep.subr.bf16.mxu0 %v750_v0 }
  0x64   :  { %634 = vmatpush3.bf16.msra.mxu0 %v689_v32 }
 0x11a   :  { %v154_v24 = vpop.f32.mrb[0].mxu0 }
 0x11b   :  { %v160_v25 = vpack.c.bf16 %v154_v24, %v154_v24  ;;  %v597_v26 = vpop.f32.mrb[1].mxu0 }
 0x11c   :  { %v157_v27 = vpop.f32.mrb[2].mxu0 }
 0x11d   :  { %v161_v29 = vmax.bf16 %v752_v28, %v160_v25  ;;  %v598_v30 = vpop.f32.mrb[3].mxu0 }
 0x11f   :  { %616 = vmatmul.mubr.bf16.vlgmr.msra.gmra.mrb[0].mxu1 %v161_v29 }
 0x120   :  { %655 = vmatprep.mubr.msk.bf16.mxu1 %vm751_vm0, %v750_v0  ;;  %640 = vmatpush3.bf16.msra.mxu1 %v690_v33 }
 0x121   :  { %641 = vmatprep.subr.bf16.mxu1 %v750_v0 }
 0x124   :  { %642 = vmatpush3.bf16.msra.mxu1 %v691_v34 }
 0x125   :  { %643 = vmatprep.subr.bf16.mxu1 %v750_v0 }
 0x128   :  { %644 = vmatpush3.bf16.msra.mxu1 %v692_v35 }
 0x129   :  { %645 = vmatprep.subr.bf16.mxu1 %v750_v0 }
 0x12c   :  { %646 = vmatpush3.bf16.msra.mxu1 %v693_v36 }
 0x12d   :  { %647 = vmatprep.subr.bf16.mxu1 %v750_v0 }
 0x130   :  { %648 = vmatpush3.bf16.msra.mxu1 %v694_v37 }
 0x131   :  { %649 = vmatprep.subr.bf16.mxu1 %v750_v0 }
 0x134   :  { %650 = vmatpush3.bf16.msra.mxu1 %v695_v38 }
 0x135   :  { %651 = vmatprep.subr.bf16.mxu1 %v750_v0 }
 0x138   :  { %652 = vmatpush3.bf16.msra.mxu1 %v696_v52 }
 0x139   :  { %653 = vmatprep.subr.bf16.mxu1 %v750_v0  ;;  %v534_v0 = vld [vmem:[%s923_s6] ss:$0 sm:$0xff] }
 0x13c   :  { %654 = vmatpush3.bf16.msra.mxu1 %v697_v53 }
 0x1f2   :  { %v260_v45 = vpop.f32.mrb[0].mxu1 }
 0x1f3   :  { %v266_v46 = vpack.c.bf16 %v260_v45, %v260_v45  ;;  %v617_v47 = vpop.f32.mrb[1].mxu1 }
 0x1f4   :  { %v263_v48 = vpop.f32.mrb[2].mxu1 }
 0x1f5   :  { %v275_v49 = vadd.bf16 %v274_v44, %v266_v46  ;;  %v618_v50 = vpop.f32.mrb[3].mxu1 }
 0x1f7   :  { %v276_v51 = vmax.bf16 %v752_v28, %v275_v49 }
 0x1f9   :  { %636 = vmatmul.mubr.bf16.vlgmr.msra.gmra.mrb[4].mxu0 %v276_v51 }
 0x2cc   :  { %v375_v57 = vpop.f32.mrb[4].mxu0 }
 0x2cd   :  { %v381_v58 = vpack.c.bf16 %v375_v57, %v375_v57  ;;  %v637_v59 = vpop.f32.mrb[5].mxu0 }
 0x2ce   :  { %v378_v60 = vpop.f32.mrb[6].mxu0 }
 0x2cf   :  { %v389_v61 = vadd.bf16 %v388_v56, %v381_v58  ;;  %v638_v62 = vpop.f32.mrb[7].mxu0 }
 0x2d1   :  { %v390_v63 = vmax.bf16 %v752_v28, %v389_v61 }
 0x2d3   :  { %656 = vmatmul.mubr.bf16.vlgmr.msra.gmra.mrb[4].mxu1 %v390_v63 }
 0x3a6   :  { %v496_v1 = vpop.f32.mrb[4].mxu1 }
 0x3a7   :  { %v497_v2 = vadd.f32 %v534_v0, %v496_v1  ;;  %v657_v3 = vpop.f32.mrb[5].mxu1 }
 0x3a8   :  { %v499_v4 = vpop.f32.mrb[6].mxu1 }
 0x3a9   :  { %503 = vst.msk [vmem:[%s924_s7] sm:$0xff] %vm502_vm1, %v497_v2  ;;  %v658_v5 = vpop.f32.mrb[7].mxu1 }
 0x3aa   :  { %508 = vsyncpa [#allocation3], 1 }
 0x3ab   :  { %509 = vsyncpa [#allocation5], 1 }

</bundles_post_ra>
